<compile_context>
chip_gen: v6e
topology: v6e:2x2x1
jax: 0.10.0
libtpu: 0.0.40
codegen_flags: <defaults>
</compile_context>

<pallas_src>
import functools
import math
from typing import NamedTuple

import jax
import jax.numpy as jnp
from jax import lax
from jax.experimental import pallas as pl
from jax.experimental.pallas import tpu as pltpu

LANE = 128


def _round_up(x, m):
    return (x + m - 1) // m * m


def resnet_kernel(x_ref, w_in_ref, b_in_ref, w_hid_ref, b_hid_ref,
                  w_out_ref, b_out_ref, o_ref, *, scale, eps):
    """One batch tile: full residual MLP + row-L2 normalization * sqrt(Pbs)."""
    cdt = w_in_ref.dtype  # dtype fed to the MXU (f32 or bf16); accum is f32

    x = x_ref[...].astype(cdt)                                        # [TB, Din]
    h = jnp.dot(x, w_in_ref[...], preferred_element_type=jnp.float32)
    h = h + b_in_ref[...].astype(jnp.float32)                         # [TB, WP]

    depth = w_hid_ref.shape[0]

    def body(d, h):
        t = jnp.dot(h.astype(cdt), w_hid_ref[d],
                    preferred_element_type=jnp.float32)
        t = t + b_hid_ref[d].astype(jnp.float32)
        return jnp.maximum(t, 0.0) + h                                # residual

    h = lax.fori_loop(0, depth, body, h, unroll=True)

    y = jnp.dot(h.astype(cdt), w_out_ref[...],
                preferred_element_type=jnp.float32)
    y = y + b_out_ref[...].astype(jnp.float32)                        # [TB, DOUTP]

    # Row L2 norm: padded columns of y are exactly 0, so summing over all 128
    # lanes equals the norm over the real out_dim columns.  rsqrt -> EUP slot.
    ss = jnp.sum(y * y, axis=1, keepdims=True)                        # [TB, 1]
    inv = lax.rsqrt(ss + eps)
    y = y * (inv * scale)
    # Store only the real output columns (masked vst; ~16 KB total, negligible).
    o_ref[...] = y[:, :o_ref.shape[1]].astype(o_ref.dtype)


class PreparedParams(NamedTuple):
    w_in: jax.Array     # [Din, WP]
    b_in: jax.Array     # [1, WP]
    w_hid: jax.Array    # [depth, WP, WP]
    b_hid: jax.Array    # [depth, 1, WP]
    w_out: jax.Array    # [WP, DOUTP]
    b_out: jax.Array    # [1, DOUTP]
    out_dim: int        # real (unpadded) output width


def prepare_params(params, *, param_dtype=jnp.bfloat16):
    """One-time weight prep: zero-pad feature dims to 128 lanes and cast.

    Zero-padding is exact: padded hidden/output columns stay 0 through the
    whole residual stack and do not perturb the per-row L2 norm (pad with
    zeros, then cast — keep this order).  Call once and reuse; doing this per
    forward call costs as much as the kernel itself for a net this small.
    """
    w_in, b_in, w_hid, b_hid, w_out, b_out = params
    in_dim, width = w_in.shape
    out_dim = w_out.shape[1]

    wp = _round_up(width, LANE)
    dout_p = _round_up(out_dim, LANE)
    pad_w = wp - width
    pad_o = dout_p - out_dim

    return PreparedParams(
        w_in=jnp.pad(w_in, ((0, 0), (0, pad_w))).astype(param_dtype),
        b_in=jnp.pad(b_in, ((0, 0), (0, pad_w))).astype(param_dtype),
        w_hid=jnp.pad(w_hid, ((0, 0), (0, pad_w), (0, pad_w))).astype(param_dtype),
        b_hid=jnp.pad(b_hid, ((0, 0), (0, 0), (0, pad_w))).astype(param_dtype),
        w_out=jnp.pad(w_out, ((0, pad_w), (0, pad_o))).astype(param_dtype),
        b_out=jnp.pad(b_out, ((0, 0), (0, pad_o))).astype(param_dtype),
        out_dim=out_dim,
    )


def _tile_rows(batch, block_b):
    """Batch tile: as large as block_b, but keep >= 2 grid steps when possible
    so both v7x TensorCores get work (harmless on 1-TC v5e/v6e)."""
    if batch >= 16:
        return min(block_b, _round_up(pl.cdiv(batch, 2), 8))
    return min(block_b, _round_up(max(batch, 1), 8))


def resnet_forward(x, prep: PreparedParams, pbs, *, block_b=256):
    batch, in_dim = x.shape
    assert in_dim == prep.w_in.shape[0]
    depth, wp, _ = prep.w_hid.shape
    dout_p = prep.w_out.shape[1]
    out_dim = prep.out_dim

    tb = _tile_rows(batch, block_b)
    b_pad = _round_up(batch, tb)

    # Only touch x if row padding is actually required; the dtype cast (if
    # any) happens inside the kernel on the tiny [tb, in_dim] tile.
    xp = x if b_pad == batch else jnp.pad(x, ((0, b_pad - batch), (0, 0)))

    kernel = functools.partial(resnet_kernel,
                               scale=float(math.sqrt(pbs)), eps=1e-12)

    const2 = lambda i: (0, 0)
    const3 = lambda i: (0, 0, 0)

    nbytes = lambda a: a.size * a.dtype.itemsize
    param_bytes = sum(nbytes(a) for a in (prep.w_in, prep.b_in, prep.w_hid,
                                          prep.b_hid, prep.w_out, prep.b_out))
    cost = pl.CostEstimate(
        flops=2 * b_pad * wp * (in_dim + depth * wp + dout_p),
        transcendentals=b_pad,                      # one rsqrt per row
        bytes_accessed=nbytes(xp) + param_bytes + b_pad * out_dim * 4,
    )

    out = pl.pallas_call(
        kernel,
        out_shape=jax.ShapeDtypeStruct((b_pad, out_dim), jnp.float32),
        grid=(b_pad // tb,),
        in_specs=[
            pl.BlockSpec((tb, in_dim), lambda i: (i, 0)),   # x: pipelined tiles
            pl.BlockSpec((in_dim, wp), const2),             # weights: VMEM-resident
            pl.BlockSpec((1, wp), const2),
            pl.BlockSpec((depth, wp, wp), const3),
            pl.BlockSpec((depth, 1, wp), const3),
            pl.BlockSpec((wp, dout_p), const2),
            pl.BlockSpec((1, dout_p), const2),
        ],
        out_specs=pl.BlockSpec((tb, out_dim), lambda i: (i, 0)),
        compiler_params=pltpu.CompilerParams(
            dimension_semantics=("parallel",)),
        cost_estimate=cost,
    )(xp, prep.w_in, prep.b_in, prep.w_hid, prep.b_hid, prep.w_out, prep.b_out)

    return out if b_pad == batch else out[:batch]


def resnet_reference(x, params, pbs):
    w_in, b_in, w_hid, b_hid, w_out, b_out = params
    h = x @ w_in + b_in[0]
    for d in range(w_hid.shape[0]):
        h = jnp.maximum(h @ w_hid[d] + b_hid[d, 0], 0.0) + h
    y = h @ w_out + b_out[0]
    power = jnp.linalg.norm(y, axis=1, keepdims=True)
    return y / power * math.sqrt(pbs)


def init_params(key, in_dim, width, depth, out_dim):
    ks = jax.random.split(key, 6)

    def u(k, shape, fan_in):
        bound = 1.0 / math.sqrt(fan_in)
        return jax.random.uniform(k, shape, jnp.float32, -bound, bound)

    w_in = u(ks[0], (in_dim, width), in_dim)
    b_in = u(ks[1], (1, width), in_dim)
    w_hid = u(ks[2], (depth, width, width), width)
    b_hid = u(ks[3], (depth, 1, width), width)
    w_out = u(ks[4], (width, out_dim), width)
    b_out = u(ks[5], (1, out_dim), width)
    return (w_in, b_in, w_hid, b_hid, w_out, b_out)


if __name__ == "__main__":
    # Module args: Ns=4, K=2, width_p=32, depth_p=3, Pbs=2.0
    Ns, K, width_p, depth_p, Pbs = 4, 2, 32, 3, 2.0
    in_dim = Ns * K * 2          # 16
    out_dim = Ns * 2             # 8
    batch = 64                   # small batched rollout -> grid of 2 parallel tiles

    key = jax.random.PRNGKey(0)
    kx, kp = jax.random.split(key)
    x = jax.random.normal(kx, (batch, in_dim), jnp.float32)
    params = init_params(kp, in_dim, width_p, depth_p, out_dim)

    ref = resnet_reference(x, params, Pbs)

    # f32 weight path: matches the reference closely.
    prep_f32 = prepare_params(params, param_dtype=jnp.float32)
    out_f32 = jax.block_until_ready(resnet_forward(x, prep_f32, Pbs))
    assert out_f32.shape == (batch, out_dim)
    assert jnp.allclose(out_f32, ref, atol=1e-5, rtol=1e-5)

    # Default path: bf16 weights / MXU inputs, f32 accumulation (v6e/v7x native,
    # v5e-safe since all elementwise math stays f32).
    prep_bf16 = prepare_params(params)
    out_bf16 = jax.block_until_ready(resnet_forward(x, prep_bf16, Pbs))
    assert out_bf16.shape == (batch, out_dim)
    assert jnp.allclose(out_bf16, ref, atol=5e-2, rtol=5e-2)

    # Uneven batch exercises the row-padding + output-slice path.
    xs = x[:50]
    out_s = jax.block_until_ready(resnet_forward(xs, prep_f32, Pbs))
    assert out_s.shape == (50, out_dim)
    assert jnp.allclose(out_s, ref[:50], atol=1e-5, rtol=1e-5)

    print("KERNEL_OK")
</pallas_src>

<mosaic_0001>
module attributes {stable_mosaic.version = 11 : i64} {
  func.func @resnet_kernel(%arg0: i32, %arg1: memref<32x16xf32, #tpu.memory_space<vmem>>, %arg2: memref<16x128xf32, #tpu.memory_space<vmem>>, %arg3: memref<1x128xf32, #tpu.memory_space<vmem>>, %arg4: memref<3x128x128xf32, #tpu.memory_space<vmem>>, %arg5: memref<3x1x128xf32, #tpu.memory_space<vmem>>, %arg6: memref<128x128xf32, #tpu.memory_space<vmem>>, %arg7: memref<1x128xf32, #tpu.memory_space<vmem>>, %arg8: memref<32x8xf32, #tpu.memory_space<vmem>>) attributes {dimension_semantics = [#tpu.dimension_semantics<parallel>], iteration_bounds = array<i64: 2>, scalar_prefetch = 0 : i64, scratch_operands = 0 : i64, tpu.core_type = #tpu.core_type<tc>, window_params = [{transform_indices = @transform_0, window_bounds = array<i64: 32, 16>}, {pipeline_mode = #tpu.pipeline_mode<synchronous>, transform_indices = @transform_1, window_bounds = array<i64: 16, 128>}, {pipeline_mode = #tpu.pipeline_mode<synchronous>, transform_indices = @transform_2, window_bounds = array<i64: 1, 128>}, {pipeline_mode = #tpu.pipeline_mode<synchronous>, transform_indices = @transform_3, window_bounds = array<i64: 3, 128, 128>}, {pipeline_mode = #tpu.pipeline_mode<synchronous>, transform_indices = @transform_4, window_bounds = array<i64: 3, 1, 128>}, {pipeline_mode = #tpu.pipeline_mode<synchronous>, transform_indices = @transform_5, window_bounds = array<i64: 128, 128>}, {pipeline_mode = #tpu.pipeline_mode<synchronous>, transform_indices = @transform_6, window_bounds = array<i64: 1, 128>}, {transform_indices = @transform_7, window_bounds = array<i64: 32, 8>}]} {
    %c0 = arith.constant 0 : index
    %c0_0 = arith.constant 0 : index
    %0 = vector.load %arg1[%c0, %c0_0] : memref<32x16xf32, #tpu.memory_space<vmem>>, vector<32x16xf32>
    %c0_1 = arith.constant 0 : index
    %c0_2 = arith.constant 0 : index
    %1 = vector.load %arg2[%c0_1, %c0_2] : memref<16x128xf32, #tpu.memory_space<vmem>>, vector<16x128xf32>
    %cst = arith.constant dense<0.000000e+00> : vector<32x128xf32>
    %2 = tpu.matmul %0, %1, %cst {dimension_numbers = #tpu.dot_dimension_numbers<[1], [0], [0], [1], [0, 0, 1, 1], [], []>} : vector<32x16xf32>, vector<16x128xf32>, vector<32x128xf32> -> vector<32x128xf32>
    %c0_3 = arith.constant 0 : index
    %c0_4 = arith.constant 0 : index
    %3 = vector.load %arg3[%c0_3, %c0_4] : memref<1x128xf32, #tpu.memory_space<vmem>>, vector<1x128xf32>
    %4 = vector.broadcast %3 : vector<1x128xf32> to vector<32x128xf32>
    %5 = arith.addf %2, %4 : vector<32x128xf32>
    %c0_i32 = arith.constant 0 : i32
    %6 = arith.index_cast %c0_i32 : i32 to index
    %c0_5 = arith.constant 0 : index
    %c0_6 = arith.constant 0 : index
    %7 = vector.load %arg4[%6, %c0_5, %c0_6] : memref<3x128x128xf32, #tpu.memory_space<vmem>>, vector<1x128x128xf32>
    %8 = vector.shape_cast %7 : vector<1x128x128xf32> to vector<128x128xf32>
    %cst_7 = arith.constant dense<0.000000e+00> : vector<32x128xf32>
    %9 = tpu.matmul %5, %8, %cst_7 {dimension_numbers = #tpu.dot_dimension_numbers<[1], [0], [0], [1], [0, 0, 1, 1], [], []>} : vector<32x128xf32>, vector<128x128xf32>, vector<32x128xf32> -> vector<32x128xf32>
    %10 = arith.index_cast %c0_i32 : i32 to index
    %c0_8 = arith.constant 0 : index
    %c0_9 = arith.constant 0 : index
    %11 = vector.load %arg5[%10, %c0_8, %c0_9] : memref<3x1x128xf32, #tpu.memory_space<vmem>>, vector<1x1x128xf32>
    %12 = vector.shape_cast %11 : vector<1x1x128xf32> to vector<1x128xf32>
    %13 = vector.broadcast %12 : vector<1x128xf32> to vector<32x128xf32>
    %14 = arith.addf %9, %13 : vector<32x128xf32>
    %cst_10 = arith.constant 0.000000e+00 : f32
    %15 = vector.broadcast %cst_10 : f32 to vector<32x128xf32>
    %16 = arith.maximumf %14, %15 : vector<32x128xf32>
    %17 = arith.addf %16, %5 : vector<32x128xf32>
    %c1_i32 = arith.constant 1 : i32
    %18 = arith.index_cast %c1_i32 : i32 to index
    %c0_11 = arith.constant 0 : index
    %c0_12 = arith.constant 0 : index
    %19 = vector.load %arg4[%18, %c0_11, %c0_12] : memref<3x128x128xf32, #tpu.memory_space<vmem>>, vector<1x128x128xf32>
    %20 = vector.shape_cast %19 : vector<1x128x128xf32> to vector<128x128xf32>
    %cst_13 = arith.constant dense<0.000000e+00> : vector<32x128xf32>
    %21 = tpu.matmul %17, %20, %cst_13 {dimension_numbers = #tpu.dot_dimension_numbers<[1], [0], [0], [1], [0, 0, 1, 1], [], []>} : vector<32x128xf32>, vector<128x128xf32>, vector<32x128xf32> -> vector<32x128xf32>
    %22 = arith.index_cast %c1_i32 : i32 to index
    %c0_14 = arith.constant 0 : index
    %c0_15 = arith.constant 0 : index
    %23 = vector.load %arg5[%22, %c0_14, %c0_15] : memref<3x1x128xf32, #tpu.memory_space<vmem>>, vector<1x1x128xf32>
    %24 = vector.shape_cast %23 : vector<1x1x128xf32> to vector<1x128xf32>
    %25 = vector.broadcast %24 : vector<1x128xf32> to vector<32x128xf32>
    %26 = arith.addf %21, %25 : vector<32x128xf32>
    %cst_16 = arith.constant 0.000000e+00 : f32
    %27 = vector.broadcast %cst_16 : f32 to vector<32x128xf32>
    %28 = arith.maximumf %26, %27 : vector<32x128xf32>
    %29 = arith.addf %28, %17 : vector<32x128xf32>
    %c2_i32 = arith.constant 2 : i32
    %30 = arith.index_cast %c2_i32 : i32 to index
    %c0_17 = arith.constant 0 : index
    %c0_18 = arith.constant 0 : index
    %31 = vector.load %arg4[%30, %c0_17, %c0_18] : memref<3x128x128xf32, #tpu.memory_space<vmem>>, vector<1x128x128xf32>
    %32 = vector.shape_cast %31 : vector<1x128x128xf32> to vector<128x128xf32>
    %cst_19 = arith.constant dense<0.000000e+00> : vector<32x128xf32>
    %33 = tpu.matmul %29, %32, %cst_19 {dimension_numbers = #tpu.dot_dimension_numbers<[1], [0], [0], [1], [0, 0, 1, 1], [], []>} : vector<32x128xf32>, vector<128x128xf32>, vector<32x128xf32> -> vector<32x128xf32>
    %34 = arith.index_cast %c2_i32 : i32 to index
    %c0_20 = arith.constant 0 : index
    %c0_21 = arith.constant 0 : index
    %35 = vector.load %arg5[%34, %c0_20, %c0_21] : memref<3x1x128xf32, #tpu.memory_space<vmem>>, vector<1x1x128xf32>
    %36 = vector.shape_cast %35 : vector<1x1x128xf32> to vector<1x128xf32>
    %37 = vector.broadcast %36 : vector<1x128xf32> to vector<32x128xf32>
    %38 = arith.addf %33, %37 : vector<32x128xf32>
    %cst_22 = arith.constant 0.000000e+00 : f32
    %39 = vector.broadcast %cst_22 : f32 to vector<32x128xf32>
    %40 = arith.maximumf %38, %39 : vector<32x128xf32>
    %41 = arith.addf %40, %29 : vector<32x128xf32>
    %c3_i32 = arith.constant 3 : i32
    %c0_23 = arith.constant 0 : index
    %c0_24 = arith.constant 0 : index
    %42 = vector.load %arg6[%c0_23, %c0_24] : memref<128x128xf32, #tpu.memory_space<vmem>>, vector<128x128xf32>
    %cst_25 = arith.constant dense<0.000000e+00> : vector<32x128xf32>
    %43 = tpu.matmul %41, %42, %cst_25 {dimension_numbers = #tpu.dot_dimension_numbers<[1], [0], [0], [1], [0, 0, 1, 1], [], []>} : vector<32x128xf32>, vector<128x128xf32>, vector<32x128xf32> -> vector<32x128xf32>
    %c0_26 = arith.constant 0 : index
    %c0_27 = arith.constant 0 : index
    %44 = vector.load %arg7[%c0_26, %c0_27] : memref<1x128xf32, #tpu.memory_space<vmem>>, vector<1x128xf32>
    %45 = vector.broadcast %44 : vector<1x128xf32> to vector<32x128xf32>
    %46 = arith.addf %43, %45 : vector<32x128xf32>
    %47 = arith.mulf %46, %46 : vector<32x128xf32>
    %cst_28 = arith.constant dense<0.000000e+00> : vector<32xf32>
    %48 = vector.multi_reduction <add>, %47, %cst_28 [1] : vector<32x128xf32> to vector<32xf32>
    %49 = vector.shape_cast %48 : vector<32xf32> to vector<32x1xf32>
    %cst_29 = arith.constant 9.99999996E-13 : f32
    %50 = vector.broadcast %cst_29 : f32 to vector<32x1xf32>
    %51 = arith.addf %49, %50 : vector<32x1xf32>
    %52 = math.rsqrt %51 : vector<32x1xf32>
    %cst_30 = arith.constant 1.41421354 : f32
    %53 = vector.broadcast %cst_30 : f32 to vector<32x1xf32>
    %54 = arith.mulf %52, %53 : vector<32x1xf32>
    %55 = vector.broadcast %54 : vector<32x1xf32> to vector<32x128xf32>
    %56 = arith.mulf %46, %55 : vector<32x128xf32>
    %57 = vector.extract_strided_slice %56 {offsets = [0, 0], sizes = [32, 8], strides = [1, 1]} : vector<32x128xf32> to vector<32x8xf32>
    %c0_31 = arith.constant 0 : index
    %c0_32 = arith.constant 0 : index
    %58 = vector.load %arg8[%c0_31, %c0_32] : memref<32x8xf32, #tpu.memory_space<vmem>>, vector<32x8xf32>
    tpu.vector_store %arg8[%c0_31, %c0_32], %57 {strides = array<i32>} : memref<32x8xf32, #tpu.memory_space<vmem>>, vector<32x8xf32>,
    return
  }
  func.func @transform_0(%arg0: i32) -> (i32, i32) {
    %c0_i32 = arith.constant 0 : i32
    %c0_i32_0 = arith.constant 0 : i32
    return %arg0, %c0_i32 : i32, i32
  }
  func.func @transform_1(%arg0: i32) -> (i32, i32) {
    %c0_i32 = arith.constant 0 : i32
    %c0_i32_0 = arith.constant 0 : i32
    %c0_i32_1 = arith.constant 0 : i32
    return %c0_i32, %c0_i32_0 : i32, i32
  }
  func.func @transform_2(%arg0: i32) -> (i32, i32) {
    %c0_i32 = arith.constant 0 : i32
    %c0_i32_0 = arith.constant 0 : i32
    %c0_i32_1 = arith.constant 0 : i32
    return %c0_i32, %c0_i32_0 : i32, i32
  }
  func.func @transform_3(%arg0: i32) -> (i32, i32, i32) {
    %c0_i32 = arith.constant 0 : i32
    %c0_i32_0 = arith.constant 0 : i32
    %c0_i32_1 = arith.constant 0 : i32
    %c0_i32_2 = arith.constant 0 : i32
    return %c0_i32, %c0_i32_0, %c0_i32_1 : i32, i32, i32
  }
  func.func @transform_4(%arg0: i32) -> (i32, i32, i32) {
    %c0_i32 = arith.constant 0 : i32
    %c0_i32_0 = arith.constant 0 : i32
    %c0_i32_1 = arith.constant 0 : i32
    %c0_i32_2 = arith.constant 0 : i32
    return %c0_i32, %c0_i32_0, %c0_i32_1 : i32, i32, i32
  }
  func.func @transform_5(%arg0: i32) -> (i32, i32) {
    %c0_i32 = arith.constant 0 : i32
    %c0_i32_0 = arith.constant 0 : i32
    %c0_i32_1 = arith.constant 0 : i32
    return %c0_i32, %c0_i32_0 : i32, i32
  }
  func.func @transform_6(%arg0: i32) -> (i32, i32) {
    %c0_i32 = arith.constant 0 : i32
    %c0_i32_0 = arith.constant 0 : i32
    %c0_i32_1 = arith.constant 0 : i32
    return %c0_i32, %c0_i32_0 : i32, i32
  }
  func.func @transform_7(%arg0: i32) -> (i32, i32) {
    %c0_i32 = arith.constant 0 : i32
    %c0_i32_0 = arith.constant 0 : i32
    return %arg0, %c0_i32 : i32, i32
  }
}

</mosaic_0001>

<bundles_post_ra>
// kernel: tpu_custom_call.1
= control target key start
LH: loop header
LB: loop body
LE: loop exit
PB: predicated region body
PF: predicated region fallthrough
CT: control target
= control target key end

     0   :  { %12 = vsyncpa [#allocation3], 0  ;;  %s1548_s0 = inlined_call_operand.vmem [shape: f32[64,16], index: 0, kind: input, shape index: {}]   ;;  %s1549_s1 = inlined_call_operand.vmem [shape: f32[16,128], index: 1, kind: input, shape index: {}]   ;;  %s1550_s2 = inlined_call_operand.vmem [shape: f32[1,128], index: 2, kind: input, shape index: {}]   ;;  %s1551_s3 = inlined_call_operand.hbm [shape: f32[3,128,128], index: 3, kind: input, shape index: {}]   ;;  %s1552_s4 = inlined_call_operand.vmem [shape: f32[3,1,128], index: 4, kind: input, shape index: {}]   ;;  %s1553_s5 = inlined_call_operand.hbm [shape: f32[128,128], index: 5, kind: input, shape index: {}]   ;;  %s1554_s6 = inlined_call_operand.vmem [shape: f32[1,128], index: 6, kind: input, shape index: {}]   ;;  %s1555_s7 = inlined_call_operand.vmem [shape: f32[64,8], index: 7, kind: output, shape index: {}]  }
   0x1   :  { %13 = vsyncpa [#allocation5], 0  ;;  %s1419_s24 = smov 0  }
   0x2 LB: > { %s994_s25 = sadd.s32 4294967295, %s1373_s24   ;;  %p996_p0 = scmp.ge.s32.totalorder %s1373_s24, 1  ;;  %s1373_s24 = sphi %s1419_s24, %s19_s24  }
   0x3   : > { %p202_p1 = scmp.lt.s32.totalorder %s1373_s24, 3  ;;  %s1375_s26 = smov [#allocation2]  }
   0x4   : > { %s220_s27 = sshll.u32 %s1375_s26, 4  ;;  %p1433_p3 = scmp.eq.s32.totalorder %s994_s25, 0  ;;  %s221_s27 = int_to_ptr.vmem [resolvable:$true] %s220_s27 }
   0x5   : > { %p1427_p2 = pnand %p996_p0, %p202_p1  ;;  %s1376_s30 = smov [#allocation4]  }
   0x6   : > { %s236_s8 = sshll.u32 %s1376_s30, 4  ;;  %s1318_s10 = scalar_lea.vmem %s221_s27, 6144  ;;  %s237_s8 = int_to_ptr.vmem [resolvable:$true] %s236_s8 }
   0x7   : > { %p1276_p4 = pneg %p1427_p2  ;;  %p1319_p7 = scmp.ne.s32.totalorder %s221_s27, %s1318_s10 }
   0x8   : > { %p1326_p10 = scmp.lt.s32.totalorder %s221_s27, %s221_s27  ;;  %p1327_p11 = scmp.lt.s32.totalorder %s1318_s10, %s1318_s10 }
   0x9   : > { %p1441_p5 = pnand %p1433_p3, %p1276_p4 }
   0xa   : > { %p1328_p12 = por %p1327_p11, %p1326_p10 }
   0xb   : > { %p1309_p6 = pneg %p1441_p5 }
   0xd   : > { %p1321_p8 = pnand %p1319_p7, %p1309_p6 }
   0xf   : > { %p1322_p9 = pneg %p1321_p8 }
  0x11   : > { %p1329_p13 = pnand %p1328_p12, %p1322_p9 }
  0x13   : > { %1332 = shalt.err (!%p1329_p13)
}
  0x14   : > { %s1377_s11 = smov 128   ;;  %s1378_s12 = smov 8  }
  0x15   : > { %1279 = dma.hbm_to_vmem [thread:$0]  (!%p1441_p5), %s1551_s3, 6144, %s221_s27, [#allocation3], %s1377_s11, %s1377_s11, %s1378_s12  }
  0x16   : > { %s1344_s15 = scalar_lea.vmem %s237_s8, 2048  ;;  %p1352_p7 = scmp.lt.s32.totalorder %s237_s8, %s237_s8 }
  0x17   : > { %p1345_p0 = scmp.ne.s32.totalorder %s237_s8, %s1344_s15  ;;  %p1353_p8 = scmp.lt.s32.totalorder %s1344_s15, %s1344_s15 }
  0x19   : > { %p1347_p1 = pnand %p1345_p0, %p1309_p6  ;;  %p1354_p10 = por %p1353_p8, %p1352_p7 }
  0x1b   : > { %p1348_p4 = pneg %p1347_p1 }
  0x1d   : > { %p1355_p9 = pnand %p1354_p10, %p1348_p4 }
  0x1f   : > { %1358 = shalt.err (!%p1355_p9)
}
  0x20   : > { %1282 = dma.hbm_to_vmem [thread:$0]  (!%p1441_p5), %s1553_s5, 2048, %s237_s8, [#allocation5], %s1377_s11, %s1377_s11, %s1378_s12  }
  0x21   : > { %264 = sbr.rel (%p1427_p2) target bundleno = 1219 (0x4c3), region = 48 }
  0x26   : > { %1364 = dma.done.wait (%p1433_p3), [#allocation3], 6144  }
  0x27   : > { %1366 = vsyncadd (%p1433_p3), [#allocation3], 4294961152 }
  0x28   : > { %1368 = dma.done.wait (%p1433_p3), [#allocation5], 2048  }
  0x29   : > { %1370 = vsyncadd (%p1433_p3), [#allocation5], 4294965248  ;;  %s1003_s18 = sshll.u32 %s994_s25, 2  ;;  %vm325_vm0 = vcmask 130048   ;;  %v317_v0 = vld [vmem:[%s1549_s1 + $0x8] sm:$0xff]  ;;  %v316_v1 = vld [vmem:[%s1549_s1] sm:$0xff] }
  0x2a   : > { %p301_p6 = scmp.lt.s32.totalorder %s1003_s18, 7  ;;  %1106 = vmatprep.subr.mxu0 %v317_v0  ;;  %v438_v4 = vld [vmem:[#allocation2 + $0x78] sm:$0xff]  ;;  %v437_v5 = vld [vmem:[#allocation2 + $0x70] sm:$0xff]  ;;  %v436_v7 = vld [vmem:[#allocation2 + $0x68] sm:$0xff]  ;;  %vm911_vm1 = vcmask 64512  }
  0x2b   : > { %1107 = vmatpush3.msra.mxu0 %v317_v0  ;;  %1116 = vmatprep.subr.mxu1 %v438_v4  ;;  %v435_v9 = vld [vmem:[#allocation2 + $0x60] sm:$0xff]  ;;  %v434_v10 = vld [vmem:[#allocation2 + $0x58] sm:$0xff]  ;;  %v433_v11 = vld [vmem:[#allocation2 + $0x50] sm:$0xff] }
  0x2c   : > { %s1560_s18 = smov (!%p301_p6, %s1003_s18), 7  ;;  %1108 = vmatprep.subr.mxu0 %v316_v1  ;;  %1117 = vmatpush3.msra.mxu1 %v438_v4  ;;  %v432_v12 = vld [vmem:[#allocation2 + $0x48] sm:$0xff]  ;;  %v431_v13 = vld [vmem:[#allocation2 + $0x40] sm:$0xff]  ;;  %v430_v14 = vld [vmem:[#allocation2 + $0x38] sm:$0xff] }
  0x2d   : > { %s1004_s19 = sshll.u32 %s1560_s18, 3  ;;  %1109 = vmatpush3.msra.mxu0 %v316_v1  ;;  %1118 = vmatprep.subr.mxu1 %v437_v5  ;;  %v429_v15 = vld [vmem:[#allocation2 + $0x30] sm:$0xff]  ;;  %v428_v16 = vld [vmem:[#allocation2 + $0x28] sm:$0xff]  ;;  %v427_v17 = vld [vmem:[#allocation2 + $0x20] sm:$0xff] }
  0x2e   : > { %s304_s22 = scalar_lea.vmem %s1548_s0, %s1004_s19  ;;  %1119 = vmatpush3.msra.mxu1 %v437_v5  ;;  %v426_v18 = vld [vmem:[#allocation2 + $0x18] sm:$0xff]  ;;  %v425_v19 = vld [vmem:[#allocation2 + $0x10] sm:$0xff]  ;;  %v424_v20 = vld [vmem:[#allocation2 + $0x8] sm:$0xff]  ;;  %s310_s17 = scalar_lea.vmem %s1555_s7, %s1004_s19 }
  0x2f   : > { %v312_v2 = vld [vmem:[%s304_s22] sm:$0xff]  ;;  %v313_v3 = vld [vmem:[%s304_s22 + $0x8] sm:$0xff]  ;;  %v314_v6 = vld [vmem:[%s304_s22 + $0x10] sm:$0xff]  ;;  %1120 = vmatprep.subr.mxu1 %v436_v7 }
  0x30   : > { %1110 = vmatprep.mubr.msk.f32.mxu0 %vm325_vm0, %v312_v2  ;;  %v315_v8 = vld [vmem:[%s304_s22 + $0x18] sm:$0xff]  ;;  %1121 = vmatpush3.msra.mxu1 %v436_v7  ;;  %v423_v21 = vld [vmem:[#allocation2] sm:$0xff]  ;;  %v554_v23 = vld [vmem:[#allocation2 + $0xf0] sm:$0xff] }
  0x31   : > { %1111 = vmatmul.mubr.msk.f32.vlgmr.msra.gmra.mxu0 %vm325_vm0, %v313_v3  ;;  %1122 = vmatprep.subr.mxu1 %v435_v9  ;;  %v555_v22 = vld [vmem:[#allocation2 + $0xf8] sm:$0xff]  ;;  %v553_v24 = vld [vmem:[#allocation2 + $0xe8] sm:$0xff]  ;;  %v552_v25 = vld [vmem:[#allocation2 + $0xe0] sm:$0xff] }
  0x32   : > { %1113 = vmatprep.mubr.msk.f32.mxu0 %vm325_vm0, %v314_v6  ;;  %1123 = vmatpush3.msra.mxu1 %v435_v9  ;;  %v551_v26 = vld [vmem:[#allocation2 + $0xd8] sm:$0xff]  ;;  %v550_v27 = vld [vmem:[#allocation2 + $0xd0] sm:$0xff]  ;;  %v549_v28 = vld [vmem:[#allocation2 + $0xc8] sm:$0xff] }
  0x33   : > { %1124 = vmatprep.subr.mxu1 %v434_v10  ;;  %1154 = vmatprep.subr.mxu0 %v555_v22  ;;  %v548_v29 = vld [vmem:[#allocation2 + $0xc0] sm:$0xff]  ;;  %v547_v30 = vld [vmem:[#allocation2 + $0xb8] sm:$0xff]  ;;  %v546_v31 = vld [vmem:[#allocation2 + $0xb0] sm:$0xff] }
  0x34   : > { %1125 = vmatpush3.msra.mxu1 %v434_v10  ;;  %1155 = vmatpush3.msra.mxu0 %v555_v22  ;;  %v545_v32 = vld [vmem:[#allocation2 + $0xa8] sm:$0xff]  ;;  %v1007_v34 = vld [vmem:[%s1550_s2] ss:$0 sm:$0xff]  ;;  %v543_v43 = vld [vmem:[#allocation2 + $0x98] sm:$0xff] }
  0x35   : > { %1114 = vmatmul.mubr.msk.f32.gmra.mxu0 %vm325_vm0, %v315_v8  ;;  %1126 = vmatprep.subr.mxu1 %v433_v11  ;;  %v544_v42 = vld [vmem:[#allocation2 + $0xa0] sm:$0xff]  ;;  %v542_v44 = vld [vmem:[#allocation2 + $0x90] sm:$0xff]  ;;  %v541_v45 = vld [vmem:[#allocation2 + $0x88] sm:$0xff] }
  0x36   : > { %1127 = vmatpush3.msra.mxu1 %v433_v11  ;;  %1156 = vmatprep.subr.mxu0 %v554_v23  ;;  %v540_v46 = vld [vmem:[#allocation2 + $0x80] sm:$0xff]  ;;  %v673_v47 = vld [vmem:[#allocation2 + $0x178] sm:$0xff]  ;;  %v672_v48 = vld [vmem:[#allocation2 + $0x170] sm:$0xff] }
  0x37   : > { %1128 = vmatprep.subr.mxu1 %v432_v12  ;;  %1157 = vmatpush3.msra.mxu0 %v554_v23  ;;  %v671_v49 = vld [vmem:[#allocation2 + $0x168] sm:$0xff]  ;;  %v670_v50 = vld [vmem:[#allocation2 + $0x160] sm:$0xff]  ;;  %v669_v51 = vld [vmem:[#allocation2 + $0x158] sm:$0xff] }
  0x38   : > { %1129 = vmatpush3.msra.mxu1 %v432_v12  ;;  %1158 = vmatprep.subr.mxu0 %v553_v24  ;;  %v668_v52 = vld [vmem:[#allocation2 + $0x150] sm:$0xff]  ;;  %v667_v53 = vld [vmem:[#allocation2 + $0x148] sm:$0xff]  ;;  %v666_v54 = vld [vmem:[#allocation2 + $0x140] sm:$0xff] }
  0x39   : > { %1130 = vmatprep.subr.mxu1 %v431_v13  ;;  %1159 = vmatpush3.msra.mxu0 %v553_v24  ;;  %v665_v55 = vld [vmem:[#allocation2 + $0x138] sm:$0xff]  ;;  %v664_v56 = vld [vmem:[#allocation2 + $0x130] sm:$0xff]  ;;  %v663_v57 = vld [vmem:[#allocation2 + $0x128] sm:$0xff] }
  0x3a   : > { %1131 = vmatpush3.msra.mxu1 %v431_v13  ;;  %1160 = vmatprep.subr.mxu0 %v552_v25  ;;  %v1012_v58 = vld [vmem:[%s1552_s4] ss:$0 sm:$0xff]  ;;  %v661_v12 = vld [vmem:[#allocation2 + $0x118] sm:$0xff]  ;;  %v660_v13 = vld [vmem:[#allocation2 + $0x110] sm:$0xff] }
  0x3b   : > { %1132 = vmatprep.subr.mxu1 %v430_v14  ;;  %1161 = vmatpush3.msra.mxu0 %v552_v25  ;;  %v662_v11 = vld [vmem:[#allocation2 + $0x120] sm:$0xff]  ;;  %v784_v22 = vld [vmem:[#allocation4 + $0x48] sm:$0xff]  ;;  %v782_v24 = vld [vmem:[#allocation4 + $0x38] sm:$0xff] }
  0x3c   : > { %1133 = vmatpush3.msra.mxu1 %v430_v14  ;;  %1162 = vmatprep.subr.mxu0 %v551_v26  ;;  %v659_v14 = vld [vmem:[#allocation2 + $0x108] sm:$0xff]  ;;  %v783_v23 = vld [vmem:[#allocation4 + $0x40] sm:$0xff]  ;;  %v781_v25 = vld [vmem:[#allocation4 + $0x30] sm:$0xff] }
  0x3d   : > { %1134 = vmatprep.subr.mxu1 %v429_v15  ;;  %1163 = vmatpush3.msra.mxu0 %v551_v26  ;;  %v780_v26 = vld [vmem:[#allocation4 + $0x28] sm:$0xff] }
  0x3e   : > { %1135 = vmatpush3.msra.mxu1 %v429_v15  ;;  %1164 = vmatprep.subr.mxu0 %v550_v27  ;;  %v658_v15 = vld [vmem:[#allocation2 + $0x100] sm:$0xff] }
  0x3f   : > { %1136 = vmatprep.subr.mxu1 %v428_v16  ;;  %1165 = vmatpush3.msra.mxu0 %v550_v27  ;;  %v1014_v27 = vld [vmem:[%s1552_s4 + $0x1] ss:$0 sm:$0xff] }
  0x40   : > { %1137 = vmatpush3.msra.mxu1 %v428_v16  ;;  %1166 = vmatprep.subr.mxu0 %v549_v28  ;;  %v790_v16 = vld [vmem:[#allocation4 + $0x78] sm:$0xff] }
  0x41   : > { %1138 = vmatprep.subr.mxu1 %v427_v17  ;;  %1167 = vmatpush3.msra.mxu0 %v549_v28 }
  0x42   : > { %1139 = vmatpush3.msra.mxu1 %v427_v17  ;;  %1168 = vmatprep.subr.mxu0 %v548_v29  ;;  %v789_v17 = vld [vmem:[#allocation4 + $0x70] sm:$0xff] }
  0x43   : > { %1140 = vmatprep.subr.mxu1 %v426_v18  ;;  %1169 = vmatpush3.msra.mxu0 %v548_v29 }
  0x44   : > { %1141 = vmatpush3.msra.mxu1 %v426_v18  ;;  %1170 = vmatprep.subr.mxu0 %v547_v30  ;;  %v788_v18 = vld [vmem:[#allocation4 + $0x68] sm:$0xff] }
  0x45   : > { %1142 = vmatprep.subr.mxu1 %v425_v19  ;;  %1171 = vmatpush3.msra.mxu0 %v547_v30 }
  0x46   : > { %1143 = vmatpush3.msra.mxu1 %v425_v19  ;;  %1172 = vmatprep.subr.mxu0 %v546_v31  ;;  %v787_v19 = vld [vmem:[#allocation4 + $0x60] sm:$0xff] }
  0x47   : > { %1144 = vmatprep.subr.mxu1 %v424_v20  ;;  %1173 = vmatpush3.msra.mxu0 %v546_v31 }
  0x48   : > { %1145 = vmatpush3.msra.mxu1 %v424_v20  ;;  %1174 = vmatprep.subr.mxu0 %v545_v32  ;;  %v786_v20 = vld [vmem:[#allocation4 + $0x58] sm:$0xff] }
  0x49   : > { %1146 = vmatprep.subr.mxu1 %v423_v21  ;;  %1175 = vmatpush3.msra.mxu0 %v545_v32 }
  0x4a   : > { %1147 = vmatpush3.msra.mxu1 %v423_v21  ;;  %1176 = vmatprep.subr.mxu0 %v544_v42  ;;  %v785_v21 = vld [vmem:[#allocation4 + $0x50] sm:$0xff] }
  0x4b   : > { %1177 = vmatpush3.msra.mxu0 %v544_v42  ;;  %1192 = vmatprep.subr.mxu1 %v673_v47 }
  0x4c   : > { %1178 = vmatprep.subr.mxu0 %v543_v43 }
  0x4d   : > { %1179 = vmatpush3.msra.mxu0 %v543_v43 }
  0x4e   : > { %1180 = vmatprep.subr.mxu0 %v542_v44 }
  0x4f   : > { %1181 = vmatpush3.msra.mxu0 %v542_v44  ;;  %v779_v44 = vld [vmem:[#allocation4 + $0x20] sm:$0xff] }
  0x50   : > { %1182 = vmatprep.subr.mxu0 %v541_v45 }
  0x51   : > { %1183 = vmatpush3.msra.mxu0 %v541_v45  ;;  %v778_v45 = vld [vmem:[#allocation4 + $0x18] sm:$0xff] }
  0x52   : > { %1184 = vmatprep.subr.mxu0 %v540_v46 }
  0x53   : > { %1185 = vmatpush3.msra.mxu0 %v540_v46  ;;  %v777_v46 = vld [vmem:[#allocation4 + $0x10] sm:$0xff] }
  0x54   : > { %1230 = vmatprep.subr.mxu0 %v790_v16 }
  0xf1   : > { %v1112_v33 = vpop.f32.mrf.mxu0 }
  0xf2   : > { %v1498_v37 = vadd.f32 %v1112_v33, %v1007_v34 }
  0xf3   : > { %v404_v35 = vpop.f32.mrf.mxu0 }
  0xf4   : > { %v1496_v36 = vadd.f32 %v1007_v34, %v404_v35 }
  0xf5   : > { %v1115_v38 = vpop.f32.mrf.mxu0 }
  0xf6   : > { %1148 = vmatprep.mubr.f32.mxu1 %v1496_v36  ;;  %v1504_v41 = vadd.f32 %v1115_v38, %v1007_v34 }
  0xf7   : > { %v414_v39 = vpop.f32.mrf.mxu0  ;;  %1149 = vmatmul.mubr.f32.vlgmr.msra.gmra.mxu1 %v1498_v37 }
  0xf8   : > { %v1502_v40 = vadd.f32 %v1007_v34, %v414_v39  ;;  %1193 = vmatpush3.msra.mxu1 %v673_v47  ;;  %v776_v47 = vld [vmem:[#allocation4 + $0x8] sm:$0xff] }
  0xf9   : > { %1194 = vmatprep.subr.mxu1 %v672_v48 }
  0xfa   : > { %1151 = vmatprep.mubr.f32.mxu1 %v1502_v40  ;;  %1195 = vmatpush3.msra.mxu1 %v672_v48  ;;  %v775_v48 = vld [vmem:[#allocation4] sm:$0xff] }
  0xfb   : > { %1152 = vmatmul.mubr.f32.gmra.mxu1 %v1504_v41  ;;  %1196 = vmatprep.subr.mxu1 %v671_v49 }
  0xfc   : > { %1197 = vmatpush3.msra.mxu1 %v671_v49  ;;  %v1016_v49 = vld [vmem:[%s1552_s4 + $0x2] ss:$0 sm:$0xff] }
  0xfd   : > { %1198 = vmatprep.subr.mxu1 %v670_v50 }
  0xfe   : > { %1199 = vmatpush3.msra.mxu1 %v670_v50 }
  0xff   : > { %1200 = vmatprep.subr.mxu1 %v669_v51 }
 0x100   : > { %1201 = vmatpush3.msra.mxu1 %v669_v51 }
 0x101   : > { %1202 = vmatprep.subr.mxu1 %v668_v52 }
 0x102   : > { %1203 = vmatpush3.msra.mxu1 %v668_v52 }
 0x103   : > { %1204 = vmatprep.subr.mxu1 %v667_v53 }
 0x104   : > { %1205 = vmatpush3.msra.mxu1 %v667_v53 }
 0x105   : > { %1206 = vmatprep.subr.mxu1 %v666_v54 }
 0x106   : > { %1207 = vmatpush3.msra.mxu1 %v666_v54 }
 0x107   : > { %1208 = vmatprep.subr.mxu1 %v665_v55 }
 0x108   : > { %1209 = vmatpush3.msra.mxu1 %v665_v55 }
 0x109   : > { %1210 = vmatprep.subr.mxu1 %v664_v56 }
 0x10a   : > { %1211 = vmatpush3.msra.mxu1 %v664_v56 }
 0x10b   : > { %1212 = vmatprep.subr.mxu1 %v663_v57 }
 0x10c   : > { %1213 = vmatpush3.msra.mxu1 %v663_v57 }
 0x10d   : > { %1214 = vmatprep.subr.mxu1 %v662_v11 }
 0x10e   : > { %1215 = vmatpush3.msra.mxu1 %v662_v11 }
 0x10f   : > { %1216 = vmatprep.subr.mxu1 %v661_v12 }
 0x110   : > { %1217 = vmatpush3.msra.mxu1 %v661_v12 }
 0x111   : > { %1218 = vmatprep.subr.mxu1 %v660_v13 }
 0x112   : > { %1219 = vmatpush3.msra.mxu1 %v660_v13 }
 0x113   : > { %1220 = vmatprep.subr.mxu1 %v659_v14 }
 0x114   : > { %1221 = vmatpush3.msra.mxu1 %v659_v14 }
 0x115   : > { %1222 = vmatprep.subr.mxu1 %v658_v15 }
 0x116   : > { %1223 = vmatpush3.msra.mxu1 %v658_v15 }
 0x1b7   : > { %v1150_v59 = vpop.f32.mrf.mxu1 }
 0x1b8   : > { %v518_v60 = vadd.f32 %v1150_v59, %v1012_v58 }
 0x1b9   : > { %v512_v61 = vpop.f32.mrf.mxu1 }
 0x1ba   : > { %v513_v62 = vadd.f32 %v1012_v58, %v512_v61  ;;  %v532_v63 = vmax.f32 %v518_v60, 0.0 }
 0x1bb   : > { %v1153_v0 = vpop.f32.mrf.mxu1 }
 0x1bc   : > { %v531_v1 = vmax.f32 %v513_v62, 0.0  ;;  %v528_v2 = vadd.f32 %v1153_v0, %v1012_v58  ;;  %v1515_v6 = vadd.f32 %v532_v63, %v1498_v37 }
 0x1bd   : > { %v522_v3 = vpop.f32.mrf.mxu1 }
 0x1be   : > { %v1512_v4 = vadd.f32 %v531_v1, %v1496_v36  ;;  %v523_v5 = vadd.f32 %v1012_v58, %v522_v3  ;;  %v534_v7 = vmax.f32 %v528_v2, 0.0  ;;  %v1017_v3 = vld [vmem:[%s1554_s6] ss:$0 sm:$0xff] }
 0x1c0   : > { %v533_v8 = vmax.f32 %v523_v5, 0.0  ;;  %1186 = vmatprep.mubr.f32.mxu0 %v1512_v4  ;;  %v1523_v10 = vadd.f32 %v534_v7, %v1504_v41 }
 0x1c1   : > { %1187 = vmatmul.mubr.f32.vlgmr.msra.gmra.mxu0 %v1515_v6 }
 0x1c2   : > { %v1520_v9 = vadd.f32 %v533_v8, %v1502_v40  ;;  %1231 = vmatpush3.msra.mxu0 %v790_v16 }
 0x1c3   : > { %1232 = vmatprep.subr.mxu0 %v789_v17 }
 0x1c4   : > { %1189 = vmatprep.mubr.f32.mxu0 %v1520_v9  ;;  %1233 = vmatpush3.msra.mxu0 %v789_v17 }
 0x1c5   : > { %1190 = vmatmul.mubr.f32.gmra.mxu0 %v1523_v10  ;;  %1234 = vmatprep.subr.mxu0 %v788_v18 }
 0x1c6   : > { %1235 = vmatpush3.msra.mxu0 %v788_v18 }
 0x1c7   : > { %1236 = vmatprep.subr.mxu0 %v787_v19 }
 0x1c8   : > { %1237 = vmatpush3.msra.mxu0 %v787_v19 }
 0x1c9   : > { %1238 = vmatprep.subr.mxu0 %v786_v20 }
 0x1ca   : > { %1239 = vmatpush3.msra.mxu0 %v786_v20 }
 0x1cb   : > { %1240 = vmatprep.subr.mxu0 %v785_v21 }
 0x1cc   : > { %1241 = vmatpush3.msra.mxu0 %v785_v21 }
 0x1cd   : > { %1242 = vmatprep.subr.mxu0 %v784_v22 }
 0x1ce   : > { %1243 = vmatpush3.msra.mxu0 %v784_v22 }
 0x1cf   : > { %1244 = vmatprep.subr.mxu0 %v783_v23 }
 0x1d0   : > { %1245 = vmatpush3.msra.mxu0 %v783_v23 }
 0x1d1   : > { %1246 = vmatprep.subr.mxu0 %v782_v24 }
 0x1d2   : > { %1247 = vmatpush3.msra.mxu0 %v782_v24 }
 0x1d3   : > { %1248 = vmatprep.subr.mxu0 %v781_v25 }
 0x1d4   : > { %1249 = vmatpush3.msra.mxu0 %v781_v25 }
 0x1d5   : > { %1250 = vmatprep.subr.mxu0 %v780_v26 }
 0x1d6   : > { %1251 = vmatpush3.msra.mxu0 %v780_v26 }
 0x1d7   : > { %1252 = vmatprep.subr.mxu0 %v779_v44 }
 0x1d8   : > { %1253 = vmatpush3.msra.mxu0 %v779_v44 }
 0x1d9   : > { %1254 = vmatprep.subr.mxu0 %v778_v45 }
 0x1da   : > { %1255 = vmatpush3.msra.mxu0 %v778_v45 }
 0x1db   : > { %1256 = vmatprep.subr.mxu0 %v777_v46 }
 0x1dc   : > { %1257 = vmatpush3.msra.mxu0 %v777_v46 }
 0x1dd   : > { %1258 = vmatprep.subr.mxu0 %v776_v47 }
 0x1de   : > { %1259 = vmatpush3.msra.mxu0 %v776_v47 }
 0x1df   : > { %1260 = vmatprep.subr.mxu0 %v775_v48 }
 0x1e0   : > { %1261 = vmatpush3.msra.mxu0 %v775_v48 }
 0x281   : > { %v1188_v28 = vpop.f32.mrf.mxu0 }
 0x282   : > { %v636_v29 = vadd.f32 %v1188_v28, %v1014_v27 }
 0x283   : > { %v630_v30 = vpop.f32.mrf.mxu0 }
 0x284   : > { %v631_v31 = vadd.f32 %v1014_v27, %v630_v30  ;;  %v650_v32 = vmax.f32 %v636_v29, 0.0 }
 0x285   : > { %v1191_v33 = vpop.f32.mrf.mxu0 }
 0x286   : > { %v649_v34 = vmax.f32 %v631_v31, 0.0  ;;  %v646_v35 = vadd.f32 %v1191_v33, %v1014_v27  ;;  %v654_v39 = vadd.f32 %v650_v32, %v1515_v6 }
 0x287   : > { %v640_v36 = vpop.f32.mrf.mxu0 }
 0x288   : > { %v653_v37 = vadd.f32 %v649_v34, %v1512_v4  ;;  %v641_v38 = vadd.f32 %v1014_v27, %v640_v36  ;;  %v652_v40 = vmax.f32 %v646_v35, 0.0 }
 0x28a   : > { %v651_v41 = vmax.f32 %v641_v38, 0.0  ;;  %1224 = vmatprep.mubr.f32.mxu1 %v653_v37  ;;  %v656_v43 = vadd.f32 %v652_v40, %v1523_v10 }
 0x28b   : > { %1225 = vmatmul.mubr.f32.vlgmr.msra.gmra.mxu1 %v654_v39 }
 0x28c   : > { %v655_v42 = vadd.f32 %v651_v41, %v1520_v9 }
 0x28e   : > { %1227 = vmatprep.mubr.f32.mxu1 %v655_v42 }
 0x28f   : > { %1228 = vmatmul.mubr.f32.gmra.mxu1 %v656_v43 }
 0x34b   : > { %v1226_v50 = vpop.f32.mrf.mxu1 }
 0x34c   : > { %v754_v51 = vadd.f32 %v1226_v50, %v1016_v49 }
 0x34d   : > { %v748_v52 = vpop.f32.mrf.mxu1 }
 0x34e   : > { %v749_v53 = vadd.f32 %v1016_v49, %v748_v52  ;;  %v768_v54 = vmax.f32 %v754_v51, 0.0 }
 0x34f   : > { %v1229_v55 = vpop.f32.mrf.mxu1 }
 0x350   : > { %v767_v56 = vmax.f32 %v749_v53, 0.0  ;;  %v764_v57 = vadd.f32 %v1229_v55, %v1016_v49  ;;  %v772_v61 = vadd.f32 %v768_v54, %v654_v39 }
 0x351   : > { %v758_v58 = vpop.f32.mrf.mxu1 }
 0x352   : > { %v771_v59 = vadd.f32 %v767_v56, %v653_v37  ;;  %v759_v60 = vadd.f32 %v1016_v49, %v758_v58  ;;  %v770_v62 = vmax.f32 %v764_v57, 0.0 }
 0x354   : > { %v769_v63 = vmax.f32 %v759_v60, 0.0  ;;  %1262 = vmatprep.mubr.f32.mxu0 %v771_v59  ;;  %v774_v1 = vadd.f32 %v770_v62, %v656_v43 }
 0x355   : > { %1263 = vmatmul.mubr.f32.vlgmr.msra.gmra.mxu0 %v772_v61 }
 0x356   : > { %v773_v0 = vadd.f32 %v769_v63, %v655_v42 }
 0x358   : > { %1265 = vmatprep.mubr.f32.mxu0 %v773_v0 }
 0x359   : > { %1266 = vmatmul.mubr.f32.gmra.mxu0 %v774_v1 }
 0x415   : > { %v1264_v2 = vpop.f32.mrf.mxu0 }
 0x416   : > { %v870_v7 = vadd.f32 %v1264_v2, %v1017_v3 }
 0x417   : > { %v864_v4 = vpop.f32.mrf.mxu0 }
 0x418   : > { %v865_v5 = vadd.f32 %v1017_v3, %v864_v4  ;;  %v884_v13 = vmul.f32 %v870_v7, %v870_v7 }
 0x419   : > { %v1267_v6 = vpop.f32.mrf.mxu0 }
 0x41a   : > { %v883_v8 = vmul.f32 %v865_v5, %v865_v5  ;;  %v880_v11 = vadd.f32 %v1267_v6, %v1017_v3 }
 0x41b   : > { %v874_v9 = vpop.f32.mrf.mxu0 }
 0x41c   : > { %v875_v10 = vadd.f32 %v1017_v3, %v874_v9  ;;  %887 = vadd.xlane.f32.xlu0 %v883_v8  ;;  %v886_v14 = vmul.f32 %v880_v11, %v880_v11 }
 0x41e   : > { %v885_v12 = vmul.f32 %v875_v10, %v875_v10 }
 0x420   : > { %891 = vadd.xlane.f32.xlu1 %v885_v12  ;;  %889 = vadd.xlane.f32.xlu0 %v884_v13 }
 0x424   : > { %893 = vadd.xlane.f32.xlu1 %v886_v14 }
 0x4a5   : > { %v888_v15 = vpop.xlane.xlu0 %887 }
 0x4a6   : > { %v895_v16 = vadd.f32 1e-12, %v888_v15 }
 0x4a8   : > { %1299 = vrsqrt.f32 %v895_v16 }
 0x4a9   : > { %v892_v17 = vpop.xlane.xlu1 %891  ;;  %v890_v18 = vpop.xlane.xlu0 %889 }
 0x4aa   : > { %v897_v19 = vadd.f32 1e-12, %v892_v17  ;;  %v896_v20 = vadd.f32 1e-12, %v890_v18 }
 0x4ac   : > { %1301 = vrsqrt.f32 %v897_v19 }
 0x4ad   : > { %1303 = vrsqrt.f32 %v896_v20  ;;  %v894_v21 = vpop.xlane.xlu1 %893 }
 0x4ae   : > { %v898_v22 = vadd.f32 1e-12, %v894_v21 }
 0x4b0   : > { %1305 = vrsqrt.f32 %v898_v22 }
 0x4b5   : > { %v1300_v23 = vpop.eup %1299 }
 0x4b6   : > { %v903_v24 = vmul.f32 1.4142135, %v1300_v23 }
 0x4b8   : > { %v907_v25 = vmul.f32 %v903_v24, %v865_v5 }
 0x4b9   : > { %v1302_v26 = vpop.eup %1301 }
 0x4ba   : > { %v1304_v27 = vpop.eup %1303  ;;  %912 = vst.msk [vmem:[%s310_s17] sm:$0xff] %vm911_vm1, %v907_v25  ;;  %v905_v28 = vmul.f32 1.4142135, %v1302_v26 }
 0x4bb   : > { %v904_v29 = vmul.f32 1.4142135, %v1304_v27 }
 0x4bc   : > { %v909_v30 = vmul.f32 %v905_v28, %v875_v10 }
 0x4bd   : > { %v1306_v31 = vpop.eup %1305  ;;  %v908_v32 = vmul.f32 %v904_v29, %v870_v7 }
 0x4be   : > { %v906_v33 = vmul.f32 1.4142135, %v1306_v31  ;;  %914 = vst.msk [vmem:[%s310_s17 + $0x10] sm:$0xff] %vm911_vm1, %v909_v30 }
 0x4bf   : > { %913 = vst.msk [vmem:[%s310_s17 + $0x8] sm:$0xff] %vm911_vm1, %v908_v32 }
 0x4c0   : > { %v910_v34 = vmul.f32 %v906_v33, %v880_v11 }
 0x4c2   : > { %915 = vst.msk [vmem:[%s310_s17 + $0x18] sm:$0xff] %vm911_vm1, %v910_v34 }
 0x4c3 PF: > { %s19_s24 = sadd.s32 1, %s1373_s24  }
 0x4c4   : > { %p16_p2 = scmp.ge.s32.totalorder %s19_s24, 4  }
 0x4c6   :  { %18 = sbr.rel (!%p16_p2) target bundleno = 2 (0x2), region = 91 }
 0x4cb   :  { %938 = vsyncpa [#allocation3], 1 }
 0x4cc   :  { %940 = vsyncpa [#allocation3 + $0x1], 1 }
 0x4cd   :  { %941 = vsyncpa [#allocation5], 1 }

</bundles_post_ra>
